<compile_context>
chip_gen: v7x
topology: tpu7x:2x2x1
jax: 0.10.0
libtpu: 0.0.40
codegen_flags: <defaults>
</compile_context>

<pallas_src>
import numpy as np
import jax
import jax.numpy as jnp
from jax.experimental import pallas as pl
from jax.experimental.pallas import tpu as pltpu


# ----------------------------------------------------------------------------
# Trace-time (numpy) weight construction — matches cv2.getGaussianKernel.
# ----------------------------------------------------------------------------
def gaussian_kernel_1d(kernel_len: int, sigma: float) -> np.ndarray:
    """Equivalent of cv2.getGaussianKernel(kernel_len, sigma) for sigma > 0."""
    ax = np.arange(kernel_len, dtype=np.float64) - (kernel_len - 1) / 2.0
    k = np.exp(-(ax ** 2) / (2.0 * sigma ** 2))
    return k / k.sum()


def make_gaussian_weight(kernel_len: int, nsig: float = 20.0) -> np.ndarray:
    """Full (K,K) weight = k1 @ k1.T — used only by the pure-JAX reference."""
    k1 = gaussian_kernel_1d(kernel_len, nsig)
    return np.outer(k1, k1).astype(np.float32)


def _axis_operator(n: int, kernel_len: int, nsig: float) -> np.ndarray:
    """(n, n) matrix applying the 1D Gaussian cross-correlation along one axis,
    with replication (edge-clamp) padding folded in:
        A[i, r] = sum_a k1[a] * [clamp(i + a - K//2, 0, n-1) == r]
    Note: A is banded with bandwidth K.
    # TODO(synk): for very large n (e.g. H >= 2048 on v7x's 64 MiB VMEM) exploit the banded
    # structure (tile the operator / K-tap shifted-add) instead of a dense (n, n) operator.
    """
    k1 = gaussian_kernel_1d(kernel_len, nsig)
    p = kernel_len // 2
    A = np.zeros((n, n), dtype=np.float64)
    for i in range(n):
        for a in range(kernel_len):
            r = min(max(i + a - p, 0), n - 1)
            A[i, r] += k1[a]
    return A


# ----------------------------------------------------------------------------
# Chunk / VMEM budgeting helpers (tiling-padded byte accounting).
# ----------------------------------------------------------------------------
_KRON_MAX_HW = 512            # fold both passes when H*W is at most this
_VMEM_BUDGET = 12 << 20       # conservative: under v5e's 16 MiB default scoped VMEM


def _round_up(x: int, m: int) -> int:
    return (x + m - 1) // m * m


def _pick_chunk(nc: int, block_bytes_fn, op_bytes: int,
                budget_bytes: int = _VMEM_BUDGET) -> int:
    """Largest images-per-step whose double-buffered in+out blocks plus resident
    operators fit the budget; prefer >= 4 grid steps (2 per v7x TensorCore keeps
    the pipeline overlapped) and an even step count."""
    def steps(c):
        return (nc + c - 1) // c

    def fits(c):
        return 2 * 2 * block_bytes_fn(c) + 2 * op_bytes <= budget_bytes

    fitting = [c for c in range(1, nc + 1) if fits(c)] or [1]
    for min_steps in (4, 2, 1):
        cands = [c for c in fitting if steps(c) >= min_steps]
        if cands:
            even = [c for c in cands if steps(c) % 2 == 0]
            return max(even or cands)
    return 1


def _compiler_params(footprint_bytes: int) -> pltpu.CompilerParams:
    kw = dict(dimension_semantics=("parallel",))
    if footprint_bytes > _VMEM_BUDGET:
        # Only raise the scoped-VMEM limit when the (padded) footprint actually needs it.
        kw["vmem_limit_bytes"] = int(min(footprint_bytes + (4 << 20), 64 << 20))
    return pltpu.CompilerParams(**kw)


# ----------------------------------------------------------------------------
# Pallas kernels.
# ----------------------------------------------------------------------------
def _kron_kernel(opT_ref, x_ref, o_ref):
    # opT_ref : (HW, HW) Kronecker-folded operator, transposed for right-mul.
    # x_ref, o_ref: (1, chunk, HW) — lane-dense last dim.
    o_ref[0] = jnp.dot(
        x_ref[0], opT_ref[...], preferred_element_type=jnp.float32
    ).astype(o_ref.dtype)


def _make_separable_kernel(chunk: int, H: int, W: int):
    def kern(avT_ref, ahT_ref, x_ref, o_ref):
        # avT_ref: (H, H) = A_v.T ; ahT_ref: (W, W) = A_h.T ; x/o: (chunk, H, W)
        x = x_ref[...]
        # Horizontal pass: one flat (chunk*H, W) @ (W, W) MXU matmul (reshape merges
        # leading dims only -> layout preserving).
        y = jnp.dot(
            x.reshape(chunk * H, W), ahT_ref[...], preferred_element_type=jnp.float32
        ).reshape(chunk, H, W)
        # Vertical pass via the transpose trick: minor-dim transpose (XLU), one flat
        # (chunk*W, H) @ (H, H) matmul, transpose back.  No operator broadcast/duplication.
        yt = jnp.swapaxes(y, 1, 2)                               # (chunk, W, H)
        zt = jnp.dot(
            yt.reshape(chunk * W, H), avT_ref[...], preferred_element_type=jnp.float32
        ).reshape(chunk, W, H)
        o_ref[...] = jnp.swapaxes(zt, 1, 2).astype(o_ref.dtype)
    return kern


# ----------------------------------------------------------------------------
# Wrapper.
# ----------------------------------------------------------------------------
def gaussian_filter(x: jax.Array, kernel_len: int, nsig: float = 20.0) -> jax.Array:
    """Forward pass of GaussianKernel: ReplicationPad2d(K//2) + per-channel conv2d with
    the (separable) Gaussian weight.  x: (N, C, H, W) float32."""
    N, C, H, W = x.shape
    NC = N * C
    HW = H * W
    itemsize = x.dtype.itemsize

    # Trace-time constants (the module's weight is a fixed, non-learned parameter).
    a_v = _axis_operator(H, kernel_len, nsig)     # (H, H), float64
    a_h = _axis_operator(W, kernel_len, nsig)     # (W, W), float64

    if HW <= _KRON_MAX_HW:
        # ---- Small-image path: single Kronecker-folded MXU matmul per block. ----
        opT = jnp.asarray(np.kron(a_v, a_h).T.astype(np.float32))        # (HW, HW)

        block_bytes = lambda c: _round_up(c, 8) * _round_up(HW, 128) * itemsize
        op_bytes = _round_up(HW, 8) * _round_up(HW, 128) * itemsize
        chunk = _pick_chunk(NC, block_bytes, op_bytes)
        g = (NC + chunk - 1) // chunk
        nc_pad = g * chunk
        footprint = 4 * block_bytes(chunk) + 2 * op_bytes

        x2 = x.reshape(NC, HW)
        if nc_pad != NC:                                 # non-divisor NC: pad, slice later
            x2 = jnp.pad(x2, ((0, nc_pad - NC), (0, 0)))
        x3 = x2.reshape(g, chunk, HW)

        cost = pl.CostEstimate(
            flops=2 * nc_pad * HW * HW, transcendentals=0,
            bytes_accessed=(2 * nc_pad * HW + HW * HW) * itemsize)

        out = pl.pallas_call(
            _kron_kernel,
            out_shape=jax.ShapeDtypeStruct((g, chunk, HW), x.dtype),
            grid=(g,),
            in_specs=[
                # Operator: constant block index -> resident, DMA'd once.
                pl.BlockSpec((HW, HW), lambda i: (0, 0)),
                pl.BlockSpec((1, chunk, HW), lambda i: (i, 0, 0)),
            ],
            out_specs=pl.BlockSpec((1, chunk, HW), lambda i: (i, 0, 0)),
            compiler_params=_compiler_params(footprint),
            cost_estimate=cost,
        )(opT, x3)
        return out.reshape(nc_pad, HW)[:NC].reshape(N, C, H, W)

    # ---- Large-image path: separable MXU passes (transpose trick, no broadcast). ----
    a_vT = jnp.asarray(a_v.T.astype(np.float32))          # (H, H)
    a_hT = jnp.asarray(a_h.T.astype(np.float32))          # (W, W)

    block_bytes = lambda c: c * _round_up(H, 8) * _round_up(W, 128) * itemsize
    op_bytes = (_round_up(H, 8) * _round_up(H, 128) +
                _round_up(W, 8) * _round_up(W, 128)) * itemsize
    chunk = _pick_chunk(NC, block_bytes, op_bytes)
    g = (NC + chunk - 1) // chunk
    nc_pad = g * chunk
    footprint = 4 * block_bytes(chunk) + 2 * op_bytes

    x2 = x.reshape(NC, H, W)
    if nc_pad != NC:
        x2 = jnp.pad(x2, ((0, nc_pad - NC), (0, 0), (0, 0)))

    # TODO(synk): for real widths that are not multiples of 128, pad W to the next 128
    # multiple (extend A_h with zero rows/cols) so loads/stores are full-lane.
    cost = pl.CostEstimate(
        flops=2 * nc_pad * (H * W * W + W * H * H), transcendentals=0,
        bytes_accessed=(2 * nc_pad * H * W + H * H + W * W) * itemsize)

    out = pl.pallas_call(
        _make_separable_kernel(chunk, H, W),
        out_shape=jax.ShapeDtypeStruct((nc_pad, H, W), x.dtype),
        grid=(g,),
        in_specs=[
            pl.BlockSpec((H, H), lambda i: (0, 0)),
            pl.BlockSpec((W, W), lambda i: (0, 0)),
            pl.BlockSpec((chunk, H, W), lambda i: (i, 0, 0)),
        ],
        out_specs=pl.BlockSpec((chunk, H, W), lambda i: (i, 0, 0)),
        compiler_params=_compiler_params(footprint),
        cost_estimate=cost,
    )(a_vT, a_hT, x2)
    return out[:NC].reshape(N, C, H, W)


# ----------------------------------------------------------------------------
# Pure-JAX reference mirroring the PyTorch module (full 2D conv, explicit pad).
# ----------------------------------------------------------------------------
def reference(x: jax.Array, kernel_len: int, nsig: float = 20.0) -> jax.Array:
    p = kernel_len // 2
    w = jnp.asarray(make_gaussian_weight(kernel_len, nsig))[None, None]  # (1,1,K,K)
    x_pad = jnp.pad(x, ((0, 0), (0, 0), (p, p), (p, p)), mode="edge")
    outs = []
    for c in range(x.shape[1]):
        outs.append(
            jax.lax.conv_general_dilated(
                x_pad[:, c:c + 1], w, window_strides=(1, 1), padding="VALID",
                dimension_numbers=("NCHW", "OIHW", "NCHW"),
                precision=jax.lax.Precision.HIGHEST,
            )
        )
    return jnp.concatenate(outs, axis=1)


if __name__ == "__main__":
    kernel_len = 5
    nsig = 20.0

    # Primary check: the module-consistent small shape -> Kronecker-folded path.
    key = jax.random.PRNGKey(0)
    x = jax.random.normal(key, (2, 4, 16, 16), dtype=jnp.float32)
    out = jax.block_until_ready(gaussian_filter(x, kernel_len, nsig))
    ref = jax.block_until_ready(reference(x, kernel_len, nsig))
    assert out.shape == (2, 4, 16, 16)
    np.testing.assert_allclose(np.asarray(out), np.asarray(ref), rtol=1e-5, atol=1e-5)

    # Secondary check: larger spatial extent -> separable (transpose-trick) path.
    x_big = jax.random.normal(jax.random.PRNGKey(1), (1, 2, 32, 128), dtype=jnp.float32)
    out_big = jax.block_until_ready(gaussian_filter(x_big, kernel_len, nsig))
    ref_big = jax.block_until_ready(reference(x_big, kernel_len, nsig))
    np.testing.assert_allclose(np.asarray(out_big), np.asarray(ref_big),
                               rtol=1e-5, atol=1e-5)

    print("KERNEL_OK")
</pallas_src>

<mosaic_0001>
module attributes {stable_mosaic.version = 11 : i64} {
  func.func @_kron_kernel(%arg0: i32, %arg1: memref<256x256xf32, #tpu.memory_space<vmem>>, %arg2: memref<1x2x256xf32, #tpu.memory_space<vmem>>, %arg3: memref<1x2x256xf32, #tpu.memory_space<vmem>>) attributes {dimension_semantics = [#tpu.dimension_semantics<parallel>], iteration_bounds = array<i64: 4>, scalar_prefetch = 0 : i64, scratch_operands = 0 : i64, tpu.core_type = #tpu.core_type<tc>, window_params = [{pipeline_mode = #tpu.pipeline_mode<synchronous>, transform_indices = @transform_0, window_bounds = array<i64: 256, 256>}, {transform_indices = @transform_1, window_bounds = array<i64: 1, 2, 256>}, {transform_indices = @transform_2, window_bounds = array<i64: 1, 2, 256>}]} {
    %c0 = arith.constant 0 : index
    %c0_0 = arith.constant 0 : index
    %c0_1 = arith.constant 0 : index
    %0 = vector.load %arg2[%c0, %c0_0, %c0_1] : memref<1x2x256xf32, #tpu.memory_space<vmem>>, vector<1x2x256xf32>
    %1 = vector.shape_cast %0 : vector<1x2x256xf32> to vector<2x256xf32>
    %c0_2 = arith.constant 0 : index
    %c0_3 = arith.constant 0 : index
    %2 = vector.load %arg1[%c0_2, %c0_3] : memref<256x256xf32, #tpu.memory_space<vmem>>, vector<256x256xf32>
    %cst = arith.constant dense<0.000000e+00> : vector<2x256xf32>
    %3 = tpu.matmul %1, %2, %cst {dimension_numbers = #tpu.dot_dimension_numbers<[1], [0], [0], [1], [0, 0, 1, 1], [], []>} : vector<2x256xf32>, vector<256x256xf32>, vector<2x256xf32> -> vector<2x256xf32>
    %c0_4 = arith.constant 0 : index
    %c0_5 = arith.constant 0 : index
    %c0_6 = arith.constant 0 : index
    %4 = vector.load %arg3[%c0_4, %c0_5, %c0_6] : memref<1x2x256xf32, #tpu.memory_space<vmem>>, vector<1x2x256xf32>
    %5 = vector.shape_cast %4 : vector<1x2x256xf32> to vector<2x256xf32>
    %6 = vector.shape_cast %3 : vector<2x256xf32> to vector<1x2x256xf32>
    tpu.vector_store %arg3[%c0_4, %c0_5, %c0_6], %6 {strides = array<i32>} : memref<1x2x256xf32, #tpu.memory_space<vmem>>, vector<1x2x256xf32>,
    return
  }
  func.func @transform_0(%arg0: i32) -> (i32, i32) {
    %c0_i32 = arith.constant 0 : i32
    %c0_i32_0 = arith.constant 0 : i32
    %c0_i32_1 = arith.constant 0 : i32
    return %c0_i32, %c0_i32_0 : i32, i32
  }
  func.func @transform_1(%arg0: i32) -> (i32, i32, i32) {
    %c0_i32 = arith.constant 0 : i32
    %c0_i32_0 = arith.constant 0 : i32
    %c0_i32_1 = arith.constant 0 : i32
    return %arg0, %c0_i32, %c0_i32_0 : i32, i32, i32
  }
  func.func @transform_2(%arg0: i32) -> (i32, i32, i32) {
    %c0_i32 = arith.constant 0 : i32
    %c0_i32_0 = arith.constant 0 : i32
    %c0_i32_1 = arith.constant 0 : i32
    return %arg0, %c0_i32, %c0_i32_0 : i32, i32, i32
  }
}

</mosaic_0001>

<bundles_post_ra>
// kernel: tpu_custom_call.1
= control target key start
LH: loop header
LB: loop body
LE: loop exit
PB: predicated region body
PF: predicated region fallthrough
CT: control target
= control target key end

     0   :  { %7 = vsyncpa [#allocation3], 0  ;;  %s923_s0 = inlined_call_operand.hbm [shape: f32[256,256], index: 0, kind: input, shape index: {}]   ;;  %s924_s1 = inlined_call_operand.hbm [shape: f32[4,2,256], index: 1, kind: input, shape index: {}]   ;;  %s925_s2 = inlined_call_operand.hbm [shape: f32[4,2,256], index: 2, kind: output, shape index: {}]  }
   0x1   :  { %8 = vsyncpa [#allocation6], 0 }
   0x2   :  { %10 = vsyncpa [#allocation6 + $0x1], 0 }
   0x3   :  { %11 = vsyncpa [#allocation4], 0 }
   0x4   :  { %13 = vsyncpa [#allocation4 + $0x1], 0  ;;  %s724_s9 = smov 0   ;;  %s726_s10 = smov 0  }
   0x5   :  { %s728_s11 = smov 0   ;;  %s730_s12 = smov 0  }
   0x6 LB: > { %s745_s13 = sadd.s32 4294967295, %s702_s12   ;;  %s431_s14 = sadd.s32 4294967294, %s702_s12   ;;  %s702_s12 = sphi %s730_s12, %s944_s12   ;;  %s698_s11 = sphi %s728_s11, %s943_s11   ;;  %s694_s10 = sphi %s726_s10, %s942_s10   ;;  %s690_s9 = sphi %s724_s9, %s941_s9  }
   0x7   : > { %p60_p0 = scmp.ne.s32.totalorder %s694_s10, %s690_s9  ;;  %p926_p1 = scmp.eq.s32.totalorder %s745_s13, 0 }
   0x8   : > { %p90_p3 = scmp.eq.s32.totalorder %s431_s14, 3  ;;  %p432_p5 = scmp.ge.s32.totalorder %s702_s12, 1 }
   0x9   : > { %p754_p4 = por %p926_p1, %p60_p0  ;;  %p97_p7 = scmp.lt.s32.totalorder %s702_s12, 5 }
   0xa   : > { %p759_p6 = por %p90_p3, %p60_p0  ;;  %s704_s18 = smov [#allocation2]  }
   0xb   : > { %s929_s15 = scalar_select %p754_p4, 1, 0 }
   0xc   : > { %s930_s16 = scalar_select %p759_p6, 1, 0 }
   0xd   : > { %p764_p8 = pnand %p432_p5, %p97_p7  ;;  %s109_s19 = sshll.u32 %s704_s18, 4  ;;  %s110_s19 = int_to_ptr.vmem [resolvable:$true] %s109_s19 }
   0xe   : > { %s777_s21 = sadd.s32 1, %s702_s12   ;;  %s47_s22 = sadd.s32 1, %s698_s11 }
   0xf   : > { %s931_s17 = scalar_select %p764_p8, 1, 0 }
  0x10   : > { %p523_p9 = pneg %p764_p8  ;;  %s44_s23 = ssub.s32 %s702_s12, %s777_s21 }
  0x11   : > { %s574_s26 = scalar_lea.hbm %s923_s0, 8192 }
  0x12   : > { %p772_p10 = pnand %p523_p9, %p926_p1  ;;  %p575_p11 = scmp.ne.s32.totalorder %s923_s0, %s574_s26 }
  0x13   : > { %p581_p3 = scmp.lt.u32.totalorder %s574_s26, %s923_s0 }
  0x14   : > { %p576_p12 = pneg %p772_p10 }
  0x16   : > { %p577_p13 = pnand %p576_p12, %p575_p11 }
  0x18   : > { %p578_p0 = pneg %p577_p13 }
  0x1a   : > { %p583_p5 = pnand %p581_p3, %p578_p0 }
  0x1c   : > { %586 = shalt.err (!%p583_p5)
}
  0x1d   : > { %s587_s3 = scalar_lea.vmem %s110_s19, 8192  ;;  %p595_p2 = scmp.lt.s32.totalorder %s110_s19, %s110_s19 }
  0x1e   : > { %p588_p7 = scmp.ne.s32.totalorder %s110_s19, %s587_s3  ;;  %p596_p6 = scmp.lt.s32.totalorder %s587_s3, %s587_s3 }
  0x20   : > { %p590_p9 = pnand %p588_p7, %p576_p12  ;;  %p597_p4 = por %p596_p6, %p595_p2 }
  0x22   : > { %p591_p1 = pneg %p590_p9 }
  0x24   : > { %p598_p8 = pnand %p597_p4, %p591_p1 }
  0x26   : > { %601 = shalt.err (!%p598_p8)
}
  0x27   : > { %s705_s4 = smov 256   ;;  %s706_s5 = smov 16  }
  0x28   : > { %526 = dma.hbm_to_vmem [thread:$0]  (!%p772_p10), %s923_s0, 8192, %s110_s19, [#allocation3], %s705_s4, %s705_s4, %s706_s5  }
  0x29   : > { %p45_p11 = scmp.eq.s32.totalorder %s44_s23, 0  ;;  %p54_p2 = scmp.ne.s32.totalorder %s698_s11, %s694_s10 }
  0x2a   : > { %p55_p1 = scmp.eq.s32.totalorder %s702_s12, 0  ;;  %p536_p4 = scmp.lt.s32.totalorder %s702_s12, 4 }
  0x2b   : > { %s803_s8 = scalar_select %p45_p11, %s698_s11, %s47_s22  }
  0x2c   : > { %p56_p6 = por %p55_p1, %p54_p2  ;;  %p933_p8 = scmp.eq.s32.totalorder %s745_s13, 3 }
  0x2d   : > { %s123_s18 = sand.u32 1, %s698_s11   ;;  %s449_s24 = sshll.u32 %s702_s12, 6 }
  0x2e   : > { %p807_p12 = por %p933_p8, %p54_p2  ;;  %s435_s25 = sshll.u32 %s123_s18, 2 }
  0x2f   : > { %s816_s27 = scalar_lea.hbm %s924_s1, %s449_s24  ;;  %s127_s19 = scalar_lea.vmem [#allocation5], %s435_s25 }
  0x30   : > { %s135_s22 = sshll.u32 %s127_s19, 4  ;;  %p818_p10 = pnand %p536_p4, %p56_p6  ;;  %s822_s22 = int_to_ptr.vmem [resolvable:$true] %s135_s22 }
  0x31   : > { %s124_s28 = scalar_lea.sflag [#allocation6], %s123_s18  ;;  %s602_s29 = scalar_lea.hbm %s816_s27, 64 }
  0x32   : > { %p603_p13 = scmp.ne.s32.totalorder %s816_s27, %s602_s29  ;;  %p604_p0 = pneg %p818_p10 }
  0x33   : > { %s607_s4 = scalar_lea.hbm %s924_s1, 256  ;;  %p608_p7 = scmp.lt.u32.totalorder %s816_s27, %s924_s1 }
  0x34   : > { %p605_p3 = pnand %p604_p0, %p603_p13  ;;  %p609_p9 = scmp.lt.u32.totalorder %s607_s4, %s602_s29 }
  0x35   : > { %p611_p2 = scmp.lt.u32.totalorder %s602_s29, %s816_s27 }
  0x36   : > { %p606_p5 = pneg %p605_p3  ;;  %p610_p11 = por %p609_p9, %p608_p7 }
  0x38   : > { %p612_p1 = por %p611_p2, %p610_p11 }
  0x3a   : > { %p613_p4 = pnand %p612_p1, %p606_p5 }
  0x3c   : > { %616 = shalt.err (!%p613_p4)
}
  0x3d   : > { %s617_s7 = scalar_lea.vmem %s822_s22, 64  ;;  %s707_s18 = smov [#allocation5]  }
  0x3e   : > { %p618_p6 = scmp.ne.s32.totalorder %s822_s22, %s617_s7  ;;  %s622_s24 = sshll.u32 %s707_s18, 4  ;;  %s623_s24 = int_to_ptr.vmem [resolvable:$false] %s622_s24 }
  0x3f   : > { %s624_s25 = scalar_lea.vmem %s623_s24, 128  ;;  %p625_p3 = scmp.lt.s32.totalorder %s822_s22, %s623_s24 }
  0x40   : > { %p620_p8 = pnand %p618_p6, %p604_p0  ;;  %p626_p7 = scmp.lt.s32.totalorder %s624_s25, %s617_s7 }
  0x42   : > { %p621_p13 = pneg %p620_p8  ;;  %p627_p9 = por %p626_p7, %p625_p3 }
  0x44   : > { %p628_p11 = pnand %p627_p9, %p621_p13 }
  0x46   : > { %631 = shalt.err (!%p628_p11)
}
  0x47   : > { %530 = dma.hbm_to_vmem [thread:$0]  (!%p818_p10), %s816_s27, 64, %s822_s22, %s124_s28  }
  0x48   : > { %p936_p5 = scmp.ne.s32.totalorder %s931_s17, 0 }
  0x49   : > { %p937_p0 = scmp.eq.s32.totalorder (!%p936_p5), %s745_s13, 0 }
  0x4a   : > { %144 = sbr.rel (%p936_p5) target bundleno = 382 (0x17e), region = 28 }
  0x51   : > { %677 = dma.done.wait (%p937_p0), [#allocation3], 8192   ;;  %p938_p2 = pmov %p937_p0 }
  0x52   : > { %s856_s20 = sand.u32 1, %s694_s10   ;;  %p939_p10 = scmp.ne.s32.totalorder %s929_s15, 0 }
  0x53   : > { %679 = vsyncadd (%p938_p2), [#allocation3], 4294959104  ;;  %s440_s26 = sshll.u32 %s856_s20, 2  ;;  %s151_s19 = scalar_lea.sflag [#allocation6], %s856_s20 }
  0x54   : > { %s862_s27 = scalar_lea.vmem [#allocation5], %s440_s26 }
  0x55   : > { %681 = dma.done.wait (%p939_p10), %s151_s19, 64  }
  0x56   : > { %683 = vsyncadd (%p939_p10), %s151_s19, 4294967232  ;;  %v177_v0 = vld [vmem:[#allocation2 + $0x8] sm:$0xff]  ;;  %v179_v1 = vld [vmem:[#allocation2 + $0x18] sm:$0xff]  ;;  %s450_s15 = sshll.u32 %s745_s13, 6  ;;  %s174_s17 = scalar_lea.vmem [#allocation7], %s440_s26 }
  0x57   : > { %v176_v2 = vld [vmem:[#allocation2] sm:$0xff]  ;;  %v451_v3 = vpack.c.bf16 %v179_v1, %v177_v0  ;;  %v178_v4 = vld [vmem:[#allocation2 + $0x10] sm:$0xff]  ;;  %v181_v5 = vld [vmem:[#allocation2 + $0x28] sm:$0xff]  ;;  %s349_s22 = sshll.u32 %s174_s17, 4  ;;  %s880_s29 = scalar_lea.hbm %s925_s2, %s450_s15  ;;  %s882_s22 = int_to_ptr.vmem [resolvable:$true] %s349_s22 }
  0x58   : > { %v183_v6 = vld [vmem:[#allocation2 + $0x38] sm:$0xff]  ;;  %v453_v7 = vpack.c.bf16 %v178_v4, %v176_v2  ;;  %v180_v9 = vld [vmem:[#allocation2 + $0x20] sm:$0xff]  ;;  %v182_v10 = vld [vmem:[#allocation2 + $0x30] sm:$0xff]  ;;  %s335_s30 = scalar_lea.sflag [#allocation4], %s856_s20  ;;  %s632_s3 = scalar_lea.vmem %s882_s22, 64 }
  0x59   : > { %v455_v8 = vpack.c.bf16 %v183_v6, %v181_v5  ;;  %v185_v11 = vld [vmem:[#allocation2 + $0x48] sm:$0xff]  ;;  %452 = vmatprep.subr.bf16.mxu0 %v451_v3  ;;  %v187_v12 = vld [vmem:[#allocation2 + $0x58] sm:$0xff]  ;;  %v457_v13 = vpack.c.bf16 %v182_v10, %v180_v9  ;;  %v184_v15 = vld [vmem:[#allocation2 + $0x40] sm:$0xff]  ;;  %p633_p1 = scmp.ne.s32.totalorder %s882_s22, %s632_s3  ;;  %s708_s13 = smov [#allocation7]  }
  0x5a   : > { %454 = vmatpush1.bf16.msra.mxu0 %v453_v7  ;;  %v459_v14 = vpack.c.bf16 %v187_v12, %v185_v11  ;;  %v186_v16 = vld [vmem:[#allocation2 + $0x50] sm:$0xff]  ;;  %v189_v17 = vld [vmem:[#allocation2 + $0x68] sm:$0xff]  ;;  %v191_v18 = vld [vmem:[#allocation2 + $0x78] sm:$0xff]  ;;  %s636_s4 = sshll.u32 %s708_s13, 4  ;;  %s637_s4 = int_to_ptr.vmem [resolvable:$false] %s636_s4 }
  0x5b   : > { %456 = vmatprep.subr.bf16.mxu0 %v455_v8  ;;  %v461_v19 = vpack.c.bf16 %v186_v16, %v184_v15  ;;  %v463_v20 = vpack.c.bf16 %v191_v18, %v189_v17  ;;  %v188_v21 = vld [vmem:[#allocation2 + $0x60] sm:$0xff]  ;;  %v190_v22 = vld [vmem:[#allocation2 + $0x70] sm:$0xff]  ;;  %v193_v23 = vld [vmem:[#allocation2 + $0x88] sm:$0xff]  ;;  %p634_p4 = pnand %p633_p1, %p807_p12  ;;  %s638_s5 = scalar_lea.vmem %s637_s4, 128 }
  0x5c   : > { %v195_v24 = vld [vmem:[#allocation2 + $0x98] sm:$0xff]  ;;  %v465_v25 = vpack.c.bf16 %v190_v22, %v188_v21  ;;  %v192_v27 = vld [vmem:[#allocation2 + $0x80] sm:$0xff]  ;;  %v194_v28 = vld [vmem:[#allocation2 + $0x90] sm:$0xff]  ;;  %p639_p8 = scmp.lt.s32.totalorder %s882_s22, %s637_s4  ;;  %p640_p13 = scmp.lt.s32.totalorder %s638_s5, %s632_s3 }
  0x5d   : > { %v467_v26 = vpack.c.bf16 %v195_v24, %v193_v23  ;;  %v197_v29 = vld [vmem:[#allocation2 + $0xa8] sm:$0xff]  ;;  %v199_v30 = vld [vmem:[#allocation2 + $0xb8] sm:$0xff]  ;;  %v469_v31 = vpack.c.bf16 %v194_v28, %v192_v27  ;;  %v196_v33 = vld [vmem:[#allocation2 + $0xa0] sm:$0xff]  ;;  %p635_p6 = pneg %p634_p4 }
  0x5e   : > { %458 = vmatpush1.bf16.msra.mxu0 %v457_v13  ;;  %v471_v32 = vpack.c.bf16 %v199_v30, %v197_v29  ;;  %v198_v34 = vld [vmem:[#allocation2 + $0xb0] sm:$0xff]  ;;  %v201_v35 = vld [vmem:[#allocation2 + $0xc8] sm:$0xff]  ;;  %v203_v36 = vld [vmem:[#allocation2 + $0xd8] sm:$0xff]  ;;  %p641_p3 = por %p640_p13, %p639_p8 }
  0x5f   : > { %460 = vmatprep.subr.bf16.mxu0 %v459_v14  ;;  %v473_v37 = vpack.c.bf16 %v198_v34, %v196_v33  ;;  %v475_v38 = vpack.c.bf16 %v203_v36, %v201_v35  ;;  %v200_v39 = vld [vmem:[#allocation2 + $0xc0] sm:$0xff]  ;;  %v202_v40 = vld [vmem:[#allocation2 + $0xd0] sm:$0xff]  ;;  %v205_v42 = vld [vmem:[#allocation2 + $0xe8] sm:$0xff] }
  0x60   : > { %v869_v41 = vld.sshfl [vmem:[%s862_s27] sm:$0x33 pattern:$0x76325410]  ;;  %v207_v43 = vld [vmem:[#allocation2 + $0xf8] sm:$0xff]  ;;  %v477_v45 = vpack.c.bf16 %v202_v40, %v200_v39  ;;  %v206_v48 = vld [vmem:[#allocation2 + $0xf0] sm:$0xff]  ;;  %p642_p7 = pnand %p641_p3, %p635_p6 }
  0x61   : > { %v248_v44 = vcombine.high %v869_v41, %v869_v41  ;;  %v479_v46 = vpack.c.bf16 %v207_v43, %v205_v42  ;;  %v204_v47 = vld [vmem:[#allocation2 + $0xe0] sm:$0xff]  ;;  %v209_v49 = vld [vmem:[#allocation2 + $0x108] sm:$0xff]  ;;  %v211_v50 = vld [vmem:[#allocation2 + $0x118] sm:$0xff] }
  0x62   : > { %462 = vmatpush1.bf16.msra.mxu0 %v461_v19  ;;  %v481_v51 = vpack.c.bf16 %v206_v48, %v204_v47  ;;  %v483_v52 = vpack.c.bf16 %v211_v50, %v209_v49  ;;  %v208_v53 = vld [vmem:[#allocation2 + $0x100] sm:$0xff]  ;;  %v210_v54 = vld [vmem:[#allocation2 + $0x110] sm:$0xff]  ;;  %v213_v55 = vld [vmem:[#allocation2 + $0x128] sm:$0xff] }
  0x63   : > { %464 = vmatprep.subr.bf16.mxu0 %v463_v20  ;;  %315 = vmatprep.mubr.f32.mxu0 %v248_v44  ;;  %v215_v56 = vld [vmem:[#allocation2 + $0x138] sm:$0xff]  ;;  %v485_v57 = vpack.c.bf16 %v210_v54, %v208_v53  ;;  %v212_v59 = vld [vmem:[#allocation2 + $0x120] sm:$0xff]  ;;  %v214_v60 = vld [vmem:[#allocation2 + $0x130] sm:$0xff] }
  0x64   : > { %v487_v58 = vpack.c.bf16 %v215_v56, %v213_v55  ;;  %v217_v61 = vld [vmem:[#allocation2 + $0x148] sm:$0xff]  ;;  %v219_v62 = vld [vmem:[#allocation2 + $0x158] sm:$0xff]  ;;  %v489_v63 = vpack.c.bf16 %v214_v60, %v212_v59  ;;  %v216_v1 = vld [vmem:[#allocation2 + $0x140] sm:$0xff] }
  0x65   : > { %v491_v0 = vpack.c.bf16 %v219_v62, %v217_v61  ;;  %v218_v2 = vld [vmem:[#allocation2 + $0x150] sm:$0xff]  ;;  %v221_v3 = vld [vmem:[#allocation2 + $0x168] sm:$0xff]  ;;  %v223_v4 = vld [vmem:[#allocation2 + $0x178] sm:$0xff] }
  0x66   : > { %466 = vmatpush1.bf16.msra.mxu0 %v465_v25  ;;  %v493_v5 = vpack.c.bf16 %v218_v2, %v216_v1  ;;  %v495_v6 = vpack.c.bf16 %v223_v4, %v221_v3  ;;  %v220_v7 = vld [vmem:[#allocation2 + $0x160] sm:$0xff]  ;;  %v222_v8 = vld [vmem:[#allocation2 + $0x170] sm:$0xff]  ;;  %v225_v9 = vld [vmem:[#allocation2 + $0x188] sm:$0xff] }
  0x67   : > { %468 = vmatprep.subr.bf16.mxu0 %v467_v26  ;;  %v227_v10 = vld [vmem:[#allocation2 + $0x198] sm:$0xff]  ;;  %v497_v11 = vpack.c.bf16 %v222_v8, %v220_v7  ;;  %v224_v13 = vld [vmem:[#allocation2 + $0x180] sm:$0xff]  ;;  %v226_v14 = vld [vmem:[#allocation2 + $0x190] sm:$0xff] }
  0x68   : > { %v499_v12 = vpack.c.bf16 %v227_v10, %v225_v9  ;;  %v229_v15 = vld [vmem:[#allocation2 + $0x1a8] sm:$0xff]  ;;  %v231_v16 = vld [vmem:[#allocation2 + $0x1b8] sm:$0xff]  ;;  %v501_v17 = vpack.c.bf16 %v226_v14, %v224_v13  ;;  %v228_v19 = vld [vmem:[#allocation2 + $0x1a0] sm:$0xff] }
  0x69   : > { %v503_v18 = vpack.c.bf16 %v231_v16, %v229_v15  ;;  %v230_v20 = vld [vmem:[#allocation2 + $0x1b0] sm:$0xff]  ;;  %v233_v21 = vld [vmem:[#allocation2 + $0x1c8] sm:$0xff]  ;;  %v235_v22 = vld [vmem:[#allocation2 + $0x1d8] sm:$0xff] }
  0x6a   : > { %470 = vmatpush1.bf16.msra.mxu0 %v469_v31  ;;  %v505_v23 = vpack.c.bf16 %v230_v20, %v228_v19  ;;  %v507_v24 = vpack.c.bf16 %v235_v22, %v233_v21  ;;  %v232_v25 = vld [vmem:[#allocation2 + $0x1c0] sm:$0xff]  ;;  %v234_v26 = vld [vmem:[#allocation2 + $0x1d0] sm:$0xff]  ;;  %v237_v27 = vld [vmem:[#allocation2 + $0x1e8] sm:$0xff] }
  0x6b   : > { %472 = vmatprep.subr.bf16.mxu0 %v471_v32  ;;  %v239_v28 = vld [vmem:[#allocation2 + $0x1f8] sm:$0xff]  ;;  %v509_v29 = vpack.c.bf16 %v234_v26, %v232_v25  ;;  %v236_v31 = vld [vmem:[#allocation2 + $0x1e0] sm:$0xff]  ;;  %v238_v32 = vld [vmem:[#allocation2 + $0x1f0] sm:$0xff] }
  0x6c   : > { %v511_v30 = vpack.c.bf16 %v239_v28, %v237_v27  ;;  %v513_v33 = vpack.c.bf16 %v238_v32, %v236_v31 }
  0x6e   : > { %474 = vmatpush1.bf16.msra.mxu0 %v473_v37 }
  0x6f   : > { %476 = vmatprep.subr.bf16.mxu0 %v475_v38 }
  0x72   : > { %478 = vmatpush1.bf16.msra.mxu0 %v477_v45 }
  0x73   : > { %480 = vmatprep.subr.bf16.mxu0 %v479_v46 }
  0x76   : > { %482 = vmatpush1.bf16.msra.mxu0 %v481_v51 }
  0x77   : > { %484 = vmatprep.subr.bf16.mxu0 %v483_v52 }
  0x7a   : > { %486 = vmatpush1.bf16.msra.mxu0 %v485_v57 }
  0x7b   : > { %488 = vmatprep.subr.bf16.mxu0 %v487_v58 }
  0x7e   : > { %490 = vmatpush1.bf16.msra.mxu0 %v489_v63 }
  0x7f   : > { %492 = vmatprep.subr.bf16.mxu0 %v491_v0 }
  0x82   : > { %494 = vmatpush1.bf16.msra.mxu0 %v493_v5 }
  0x83   : > { %496 = vmatprep.subr.bf16.mxu0 %v495_v6 }
  0x86   : > { %498 = vmatpush1.bf16.msra.mxu0 %v497_v11 }
  0x87   : > { %500 = vmatprep.subr.bf16.mxu0 %v499_v12 }
  0x8a   : > { %502 = vmatpush1.bf16.msra.mxu0 %v501_v17 }
  0x8b   : > { %504 = vmatprep.subr.bf16.mxu0 %v503_v18 }
  0x8e   : > { %506 = vmatpush1.bf16.msra.mxu0 %v505_v23 }
  0x8f   : > { %508 = vmatprep.subr.bf16.mxu0 %v507_v24 }
  0x92   : > { %510 = vmatpush1.bf16.msra.mxu0 %v509_v29 }
  0x93   : > { %512 = vmatprep.subr.bf16.mxu0 %v511_v30 }
  0x96   : > { %514 = vmatpush1.bf16.msra.mxu0 %v513_v33 }
  0x99   : > { %316 = vmatmul.mubr.f32.vlgmr.msra.gmra.mrb[0].mxu0 %v869_v41 }
 0x16c   : > { %v317_v34 = vpop.f32.mrb[0].mxu0 }
 0x16d   : > { %v319_v35 = vpop.f32.mrb[1].mxu0 }
 0x16e   : > { %v324_v36 = vcombine.low %v317_v34, %v319_v35 }
 0x170   : > { %443 = vst.sshfl [vmem:[%s174_s17] sm:$0x33 pattern:$0x76325410] %v324_v36 }
 0x171   : > { %645 = shalt.err (!%p642_p7)
}
 0x172   : > { %s646_s6 = scalar_lea.hbm %s880_s29, 64  ;;  %s650_s24 = scalar_lea.hbm %s925_s2, 256 }
 0x173   : > { %p647_p9 = scmp.ne.s32.totalorder %s880_s29, %s646_s6  ;;  %p651_p0 = scmp.lt.u32.totalorder %s880_s29, %s925_s2 }
 0x174   : > { %p652_p2 = scmp.lt.u32.totalorder %s650_s24, %s646_s6  ;;  %p654_p1 = scmp.lt.u32.totalorder %s646_s6, %s880_s29 }
 0x175   : > { %p648_p11 = pnand %p647_p9, %p807_p12 }
 0x176   : > { %p653_p10 = por %p652_p2, %p651_p0 }
 0x177   : > { %p649_p5 = pneg %p648_p11 }
 0x178   : > { %p655_p4 = por %p654_p1, %p653_p10 }
 0x17a   : > { %p656_p6 = pnand %p655_p4, %p649_p5 }
 0x17c   : > { %659 = shalt.err (!%p656_p6)
}
 0x17d   : > { %521 = dma.vmem_to_hbm [thread:$0]  (%p807_p12), %s882_s22, 64, %s880_s29, %s335_s30  }
 0x17e PF: > { %p538_p8 = scmp.ge.s32.totalorder %s702_s12, 2  ;;  %s361_s26 = sand.u32 1, %s690_s9  }
 0x17f   : > { %p940_p13 = scmp.ne.s32.totalorder %s930_s16, 0  ;;  %s362_s19 = scalar_lea.sflag [#allocation4], %s361_s26 }
 0x181   : > { %p532_p3 = pnand %p538_p8, %p940_p13 }
 0x183   : > { %685 = dma.done.wait (!%p532_p3), %s362_s19, 64  }
 0x184   : > { %687 = vsyncadd (!%p532_p3), %s362_s19, 4294967232  ;;  %p16_p7 = scmp.ge.s32.totalorder %s777_s21, 6   ;;  %s941_s9 = smov %s694_s10 }
 0x185   : > { %s942_s10 = smov %s698_s11  ;;  %s943_s11 = smov %s803_s8 }
 0x186   : > { %s944_s12 = smov %s777_s21  ;;  %18 = sbr.rel (!%p16_p7) target bundleno = 6 (0x6), region = 78 }
 0x18d   :  { %367 = vsyncpa [#allocation3], 1 }
 0x18e   :  { %369 = vsyncpa [#allocation3 + $0x1], 1 }
 0x18f   :  { %370 = vsyncpa [#allocation6], 1 }
 0x190   :  { %372 = vsyncpa [#allocation6 + $0x1], 1 }
 0x191   :  { %373 = vsyncpa [#allocation4], 1 }
 0x192   :  { %375 = vsyncpa [#allocation4 + $0x1], 1 }

</bundles_post_ra>
